<compile_context>
chip_gen: v6e
topology: v6e:2x2x1
jax: 0.10.0
libtpu: 0.0.40
codegen_flags: <defaults>
</compile_context>

<pallas_src>
import jax
import jax.numpy as jnp
from jax import lax
from jax.experimental import pallas as pl
from jax.experimental.pallas import tpu as pltpu


# ------------------------- Pallas kernel -------------------------

def _make_mlp_kernel(tanh_dtype=jnp.float32):
    def _mlp_kernel(x_ref, w1_ref, b1_ref, w2_ref, b2_ref, w3_ref, b3_ref,
                    o_ref):
        # x_ref : (TB, D_in)  -- natural batch-major layout, no wrapper transpose.
        # w1_ref: (H, D_in), b1_ref: (H, 1)
        # w2_ref: (H, H),    b2_ref: (H, 1)
        # w3_ref: (H, 1),    b3_ref: (1, 1)
        # o_ref : (1, TB)    -- lane-dense, contiguous-in-HBM output tile.

        # Layer 1: contract the feature dims of (H, D_in) and (TB, D_in)
        # directly -> (H, TB).  Batch lands on the lane axis.
        h = lax.dot_general(
            w1_ref[...], x_ref[...], (((1,), (1,)), ((), ())),
            preferred_element_type=jnp.float32)
        h = jnp.tanh((h + b1_ref[...]).astype(tanh_dtype)).astype(jnp.float32)

        # Layer 2: (H, H) @ (H, TB) -> (H, TB).
        h = jnp.dot(w2_ref[...], h, preferred_element_type=jnp.float32)
        h = jnp.tanh((h + b2_ref[...]).astype(tanh_dtype)).astype(jnp.float32)

        # Layer 3 (H -> 1): VPU multiply + sublane (XLU) reduction; output
        # stays lane-dense (1, TB).
        out = jnp.sum(h * w3_ref[...], axis=0, keepdims=True) + b3_ref[...]
        o_ref[...] = out.astype(o_ref.dtype)

    return _mlp_kernel


def mlp_forward(x, params, *, tile_b=4096, tanh_dtype=jnp.float32):
    """Fused MLP forward: tanh(tanh(x@W1+b1)@W2+b2)@W3+b3.

    x: (B, D_in) float32.
    params: weights stored as (in, out), biases as (1, out); laid out for the
    kernel inside this wrapper (tiny arrays, negligible cost).
    """
    B, D_in = x.shape
    w1, b1 = params["w1"], params["b1"]   # (D_in, H), (1, H)
    w2, b2 = params["w2"], params["b2"]   # (H, H),    (1, H)
    w3, b3 = params["w3"], params["b3"]   # (H, 1),    (1, 1)

    # Kernel-side weight layout: (out, in) weights, (out, 1) hidden biases.
    w1T, w2T = w1.T, w2.T                 # (H, D_in), (H, H)
    b1T, b2T = b1.T, b2.T                 # (H, 1)

    # --- batch tile selection (multiple of 128 lanes) ---
    tile_b = max(128, (min(int(tile_b), 8192) // 128) * 128)
    B_128 = pl.cdiv(B, 128) * 128
    if B_128 >= 256:
        # Guarantee >= 2 grid steps so the "parallel" batch axis can shard
        # across v7x's two TensorCores (harmless single extra step elsewhere).
        tile_b = min(tile_b, (B_128 // 2) // 128 * 128)
    else:
        tile_b = B_128                    # single tiny step for small batches
    B_pad = pl.cdiv(B, tile_b) * tile_b

    # Pad along batch only (no transpose).  Skipped entirely when divisible.
    x_p = x if B_pad == B else jnp.pad(x, ((0, B_pad - B), (0, 0)))

    grid = (B_pad // tile_b,)

    def full(arr):
        # Grid-invariant whole-array block: same block index every step, so
        # Pallas DMAs it once and does not re-fetch per grid step.
        return pl.BlockSpec(arr.shape, lambda i, _nd=arr.ndim: (0,) * _nd)

    out_row = pl.pallas_call(
        _make_mlp_kernel(tanh_dtype),
        out_shape=jax.ShapeDtypeStruct((1, B_pad), x.dtype),
        grid_spec=pltpu.PrefetchScalarGridSpec(
            num_scalar_prefetch=0,
            grid=grid,
            in_specs=[
                pl.BlockSpec((tile_b, D_in), lambda i: (i, 0)),  # x tile
                full(w1T), full(b1T),
                full(w2T), full(b2T),
                full(w3), full(b3),
            ],
            out_specs=pl.BlockSpec((1, tile_b), lambda i: (0, i)),
        ),
        compiler_params=pltpu.CompilerParams(
            dimension_semantics=("parallel",),   # shard tiles across v7x cores
        ),
    )(x_p, w1T, b1T, w2T, b2T, w3, b3)

    # Row-0 slice + reshape is a free relayout (row is contiguous); padded
    # batch lanes (garbage = net(0)) are sliced off here.
    return out_row[0, :B].reshape(B, 1)


# -------------------- Parameter setup (deterministic) --------------------

def init_params(key, spatial_dim, nodes):
    """Mimics nn.Linear default init: U(-1/sqrt(fan_in), 1/sqrt(fan_in))."""
    dims = [spatial_dim, nodes, nodes, 1]   # layers=2 hidden layers + output
    params = {}
    for idx in range(3):
        fan_in, fan_out = dims[idx], dims[idx + 1]
        key, kw, kb = jax.random.split(key, 3)
        bound = 1.0 / (fan_in ** 0.5)
        params[f"w{idx + 1}"] = jax.random.uniform(
            kw, (fan_in, fan_out), jnp.float32, -bound, bound)
        params[f"b{idx + 1}"] = jax.random.uniform(
            kb, (1, fan_out), jnp.float32, -bound, bound)
    return params


def reference_forward(x, params):
    h = jnp.tanh(x @ params["w1"] + params["b1"])
    h = jnp.tanh(h @ params["w2"] + params["b2"])
    return h @ params["w3"] + params["b3"]


if __name__ == "__main__":
    # config equivalent: {'precision': 'float32', 'activation': 'tanh',
    #                     'layers': 2, 'nodes': 32, 'spatial_dim': 4}
    spatial_dim = 4
    nodes = 32
    batch = 16

    key = jax.random.PRNGKey(0)
    key, kx = jax.random.split(key)
    x = jax.random.normal(kx, (batch, spatial_dim), dtype=jnp.float32)
    params = init_params(key, spatial_dim, nodes)

    out = jax.block_until_ready(mlp_forward(x, params))
    ref = reference_forward(x, params)
    assert out.shape == (batch, 1)
    assert jnp.allclose(out, ref, atol=1e-5, rtol=1e-5)

    # Multi-tile path: ragged batch, >=2 grid steps (v7x two-core sharding),
    # batch padding branch exercised.
    key, kx2 = jax.random.split(key)
    x_big = jax.random.normal(kx2, (300, spatial_dim), dtype=jnp.float32)
    out_big = jax.block_until_ready(mlp_forward(x_big, params))
    ref_big = reference_forward(x_big, params)
    assert out_big.shape == (300, 1)
    assert jnp.allclose(out_big, ref_big, atol=1e-5, rtol=1e-5)

    print("KERNEL_OK")
</pallas_src>

<mosaic_0001>
module attributes {stable_mosaic.version = 11 : i64} {
  func.func @_mlp_kernel(%arg0: i32, %arg1: memref<128x4xf32, #tpu.memory_space<vmem>>, %arg2: memref<32x4xf32, #tpu.memory_space<vmem>>, %arg3: memref<32x1xf32, #tpu.memory_space<vmem>>, %arg4: memref<32x32xf32, #tpu.memory_space<vmem>>, %arg5: memref<32x1xf32, #tpu.memory_space<vmem>>, %arg6: memref<32x1xf32, #tpu.memory_space<vmem>>, %arg7: memref<1x1xf32, #tpu.memory_space<vmem>>, %arg8: memref<1x128xf32, #tpu.memory_space<vmem>>) attributes {dimension_semantics = [#tpu.dimension_semantics<parallel>], iteration_bounds = array<i64: 1>, scalar_prefetch = 0 : i64, scratch_operands = 0 : i64, tpu.core_type = #tpu.core_type<tc>, window_params = [{transform_indices = @transform_0, window_bounds = array<i64: 128, 4>}, {pipeline_mode = #tpu.pipeline_mode<synchronous>, transform_indices = @transform_1, window_bounds = array<i64: 32, 4>}, {pipeline_mode = #tpu.pipeline_mode<synchronous>, transform_indices = @transform_2, window_bounds = array<i64: 32, 1>}, {pipeline_mode = #tpu.pipeline_mode<synchronous>, transform_indices = @transform_3, window_bounds = array<i64: 32, 32>}, {pipeline_mode = #tpu.pipeline_mode<synchronous>, transform_indices = @transform_4, window_bounds = array<i64: 32, 1>}, {pipeline_mode = #tpu.pipeline_mode<synchronous>, transform_indices = @transform_5, window_bounds = array<i64: 32, 1>}, {pipeline_mode = #tpu.pipeline_mode<synchronous>, transform_indices = @transform_6, window_bounds = array<i64: 1, 1>}, {transform_indices = @transform_7, window_bounds = array<i64: 1, 128>}]} {
    %c0 = arith.constant 0 : index
    %c0_0 = arith.constant 0 : index
    %0 = vector.load %arg2[%c0, %c0_0] : memref<32x4xf32, #tpu.memory_space<vmem>>, vector<32x4xf32>
    %c0_1 = arith.constant 0 : index
    %c0_2 = arith.constant 0 : index
    %1 = vector.load %arg1[%c0_1, %c0_2] : memref<128x4xf32, #tpu.memory_space<vmem>>, vector<128x4xf32>
    %cst = arith.constant dense<0.000000e+00> : vector<32x128xf32>
    %2 = tpu.matmul %0, %1, %cst {dimension_numbers = #tpu.dot_dimension_numbers<[1], [1], [0], [0], [0, 0, 1, 0], [], []>} : vector<32x4xf32>, vector<128x4xf32>, vector<32x128xf32> -> vector<32x128xf32>
    %c0_3 = arith.constant 0 : index
    %c0_4 = arith.constant 0 : index
    %3 = vector.load %arg3[%c0_3, %c0_4] : memref<32x1xf32, #tpu.memory_space<vmem>>, vector<32x1xf32>
    %4 = vector.broadcast %3 : vector<32x1xf32> to vector<32x128xf32>
    %5 = arith.addf %2, %4 : vector<32x128xf32>
    %6 = math.tanh %5 : vector<32x128xf32>
    %c0_5 = arith.constant 0 : index
    %c0_6 = arith.constant 0 : index
    %7 = vector.load %arg4[%c0_5, %c0_6] : memref<32x32xf32, #tpu.memory_space<vmem>>, vector<32x32xf32>
    %cst_7 = arith.constant dense<0.000000e+00> : vector<32x128xf32>
    %8 = tpu.matmul %7, %6, %cst_7 {dimension_numbers = #tpu.dot_dimension_numbers<[1], [0], [0], [1], [0, 0, 1, 1], [], []>} : vector<32x32xf32>, vector<32x128xf32>, vector<32x128xf32> -> vector<32x128xf32>
    %c0_8 = arith.constant 0 : index
    %c0_9 = arith.constant 0 : index
    %9 = vector.load %arg5[%c0_8, %c0_9] : memref<32x1xf32, #tpu.memory_space<vmem>>, vector<32x1xf32>
    %10 = vector.broadcast %9 : vector<32x1xf32> to vector<32x128xf32>
    %11 = arith.addf %8, %10 : vector<32x128xf32>
    %12 = math.tanh %11 : vector<32x128xf32>
    %c0_10 = arith.constant 0 : index
    %c0_11 = arith.constant 0 : index
    %13 = vector.load %arg6[%c0_10, %c0_11] : memref<32x1xf32, #tpu.memory_space<vmem>>, vector<32x1xf32>
    %14 = vector.broadcast %13 : vector<32x1xf32> to vector<32x128xf32>
    %15 = arith.mulf %12, %14 : vector<32x128xf32>
    %cst_12 = arith.constant dense<0.000000e+00> : vector<128xf32>
    %16 = vector.multi_reduction <add>, %15, %cst_12 [0] : vector<32x128xf32> to vector<128xf32>
    %17 = vector.shape_cast %16 : vector<128xf32> to vector<1x128xf32>
    %c0_13 = arith.constant 0 : index
    %c0_14 = arith.constant 0 : index
    %18 = vector.load %arg7[%c0_13, %c0_14] : memref<1x1xf32, #tpu.memory_space<vmem>>, vector<1x1xf32>
    %19 = vector.broadcast %18 : vector<1x1xf32> to vector<1x128xf32>
    %20 = arith.addf %17, %19 : vector<1x128xf32>
    %c0_15 = arith.constant 0 : index
    %c0_16 = arith.constant 0 : index
    %21 = vector.load %arg8[%c0_15, %c0_16] : memref<1x128xf32, #tpu.memory_space<vmem>>, vector<1x128xf32>
    tpu.vector_store %arg8[%c0_15, %c0_16], %20 {strides = array<i32>} : memref<1x128xf32, #tpu.memory_space<vmem>>, vector<1x128xf32>,
    return
  }
  func.func @transform_0(%arg0: i32) -> (i32, i32) {
    %c0_i32 = arith.constant 0 : i32
    %c0_i32_0 = arith.constant 0 : i32
    return %arg0, %c0_i32 : i32, i32
  }
  func.func @transform_1(%arg0: i32) -> (i32, i32) {
    %c0_i32 = arith.constant 0 : i32
    %c0_i32_0 = arith.constant 0 : i32
    %c0_i32_1 = arith.constant 0 : i32
    return %c0_i32, %c0_i32_0 : i32, i32
  }
  func.func @transform_2(%arg0: i32) -> (i32, i32) {
    %c0_i32 = arith.constant 0 : i32
    %c0_i32_0 = arith.constant 0 : i32
    %c0_i32_1 = arith.constant 0 : i32
    return %c0_i32, %c0_i32_0 : i32, i32
  }
  func.func @transform_3(%arg0: i32) -> (i32, i32) {
    %c0_i32 = arith.constant 0 : i32
    %c0_i32_0 = arith.constant 0 : i32
    %c0_i32_1 = arith.constant 0 : i32
    return %c0_i32, %c0_i32_0 : i32, i32
  }
  func.func @transform_4(%arg0: i32) -> (i32, i32) {
    %c0_i32 = arith.constant 0 : i32
    %c0_i32_0 = arith.constant 0 : i32
    %c0_i32_1 = arith.constant 0 : i32
    return %c0_i32, %c0_i32_0 : i32, i32
  }
  func.func @transform_5(%arg0: i32) -> (i32, i32) {
    %c0_i32 = arith.constant 0 : i32
    %c0_i32_0 = arith.constant 0 : i32
    %c0_i32_1 = arith.constant 0 : i32
    return %c0_i32, %c0_i32_0 : i32, i32
  }
  func.func @transform_6(%arg0: i32) -> (i32, i32) {
    %c0_i32 = arith.constant 0 : i32
    %c0_i32_0 = arith.constant 0 : i32
    %c0_i32_1 = arith.constant 0 : i32
    return %c0_i32, %c0_i32_0 : i32, i32
  }
  func.func @transform_7(%arg0: i32) -> (i32, i32) {
    %c0_i32 = arith.constant 0 : i32
    %c0_i32_0 = arith.constant 0 : i32
    return %c0_i32, %arg0 : i32, i32
  }
}

</mosaic_0001>

<bundles_post_ra>
// kernel: tpu_custom_call.1
= control target key start
LH: loop header
LB: loop body
LE: loop exit
PB: predicated region body
PF: predicated region fallthrough
CT: control target
= control target key end

     0   :  { %s758_s0 = inlined_call_operand.vmem [shape: f32[128,4], index: 0, kind: input, shape index: {}]   ;;  %s759_s1 = inlined_call_operand.vmem [shape: f32[32,4], index: 1, kind: input, shape index: {}]   ;;  %s760_s2 = inlined_call_operand.vmem [shape: f32[32,1], index: 2, kind: input, shape index: {}]   ;;  %s761_s3 = inlined_call_operand.vmem [shape: f32[32,32], index: 3, kind: input, shape index: {}]   ;;  %s762_s4 = inlined_call_operand.vmem [shape: f32[32,1], index: 4, kind: input, shape index: {}]   ;;  %s763_s5 = inlined_call_operand.vmem [shape: f32[32,1], index: 5, kind: input, shape index: {}]   ;;  %s764_s6 = inlined_call_operand.<no memory space> [shape: f32[1,1], index: 6, kind: input, shape index: {}]   ;;  %s765_s7 = inlined_call_operand.hbm [shape: f32[1,128], index: 7, kind: output, shape index: {}]  }
   0x1   :  { %v12_v0 = vstv %s764_s6 }
   0x2   :  { %13 = vst [vmem:[#allocation2] sm:$0x1] %v12_v0 }
   0x3   :  { %v48_v1 = vld [vmem:[%s758_s0 + $0x78] sm:$0xff]  ;;  %vm73_vm0 = vcmask 31744   ;;  %v47_v2 = vld [vmem:[%s758_s0 + $0x70] sm:$0xff]  ;;  %v562_v3 = vmov 0   ;;  %v46_v4 = vld [vmem:[%s758_s0 + $0x68] sm:$0xff] }
   0x4   :  { %468 = vmatprep.subr.msk.mxu0 %vm73_vm0, %v48_v1  ;;  %522 = vset.pattern.permute.xlu0 %v562_v3  ;;  %v29_v5 = vld [vmem:[%s759_s1] sm:$0xff]  ;;  %v52_v6 = vld [vmem:[%s760_s2 + $0x18] sm:$0xff]  ;;  %v50_v7 = vld [vmem:[%s760_s2 + $0x8] sm:$0xff] }
   0x5   :  { %469 = vmatpush3.xpose.msk.msra.mxu0 %vm73_vm0, %v48_v1  ;;  %523 = vset.pattern.permute.xlu1 %v562_v3  ;;  %v45_v8 = vld [vmem:[%s758_s0 + $0x60] sm:$0xff]  ;;  %v51_v9 = vld [vmem:[%s760_s2 + $0x10] sm:$0xff] }
   0x6   :  { %470 = vmatprep.subr.msk.mxu0 %vm73_vm0, %v47_v2  ;;  %500 = vmatprep.mubr.msk.f32.mxu0 %vm73_vm0, %v29_v5  ;;  %v49_v10 = vld [vmem:[%s760_s2] sm:$0xff] }
   0x7   :  { %70 = vperm.xlu0 %522, %v52_v6   ;;  %60 = vperm.xlu1 %523, %v50_v7  }
   0x9   :  { %471 = vmatpush3.xpose.msk.msra.mxu0 %vm73_vm0, %v47_v2 }
   0xa   :  { %472 = vmatprep.subr.msk.mxu0 %vm73_vm0, %v46_v4 }
   0xb   :  { %65 = vperm.xlu0 %522, %v51_v9  }
   0xd   :  { %473 = vmatpush3.xpose.msk.msra.mxu0 %vm73_vm0, %v46_v4 }
   0xe   :  { %474 = vmatprep.subr.msk.mxu0 %vm73_vm0, %v45_v8 }
   0xf   :  { %14 = vsyncpa [#allocation4], 0  ;;  %v44_v11 = vld [vmem:[%s758_s0 + $0x58] sm:$0xff]  ;;  %v227_v12 = vld [vmem:[%s762_s4] sm:$0xff]  ;;  %55 = vperm.xlu1 %523, %v49_v10   ;;  %vm251_vm1 = vcmask 261120  }
  0x10   :  { %v228_v13 = vld [vmem:[%s762_s4 + $0x8] sm:$0xff]  ;;  %233 = vperm.xlu0 %522, %v227_v12   ;;  %v43_v14 = vld [vmem:[%s758_s0 + $0x50] sm:$0xff]  ;;  %v230_v16 = vld [vmem:[%s762_s4 + $0x18] sm:$0xff] }
  0x11   :  { %475 = vmatpush3.xpose.msk.msra.mxu0 %vm73_vm0, %v45_v8  ;;  %v229_v15 = vld [vmem:[%s762_s4 + $0x10] sm:$0xff]  ;;  %v42_v17 = vld [vmem:[%s758_s0 + $0x48] sm:$0xff]  ;;  %v353_v18 = vld [vmem:[%s763_s5] sm:$0xff] }
  0x12   :  { %476 = vmatprep.subr.msk.mxu0 %vm73_vm0, %v44_v11  ;;  %v354_v19 = vld [vmem:[%s763_s5 + $0x8] sm:$0xff]  ;;  %v41_v20 = vld [vmem:[%s758_s0 + $0x40] sm:$0xff]  ;;  %v355_v21 = vld [vmem:[%s763_s5 + $0x10] sm:$0xff] }
  0x13   :  { %238 = vperm.xlu1 %523, %v228_v13   ;;  %v356_v22 = vld [vmem:[%s763_s5 + $0x18] sm:$0xff]  ;;  %v390_v24 = vld [vmem:[#allocation2] sm:$0x1]  ;;  %v39_v25 = vld [vmem:[%s758_s0 + $0x30] sm:$0xff] }
  0x14   :  { %243 = vperm.xlu0 %522, %v229_v15   ;;  %v40_v23 = vld [vmem:[%s758_s0 + $0x38] sm:$0xff]  ;;  %v38_v26 = vld [vmem:[%s758_s0 + $0x28] sm:$0xff]  ;;  %v37_v27 = vld [vmem:[%s758_s0 + $0x20] sm:$0xff] }
  0x15   :  { %477 = vmatpush3.xpose.msk.msra.mxu0 %vm73_vm0, %v44_v11  ;;  %v36_v28 = vld [vmem:[%s758_s0 + $0x18] sm:$0xff]  ;;  %v35_v29 = vld [vmem:[%s758_s0 + $0x10] sm:$0xff]  ;;  %v34_v30 = vld [vmem:[%s758_s0 + $0x8] sm:$0xff] }
  0x16   :  { %478 = vmatprep.subr.msk.mxu0 %vm73_vm0, %v43_v14  ;;  %v33_v31 = vld [vmem:[%s758_s0] sm:$0xff]  ;;  %v30_v32 = vld [vmem:[%s759_s1 + $0x8] sm:$0xff]  ;;  %v31_v33 = vld [vmem:[%s759_s1 + $0x10] sm:$0xff] }
  0x17   :  { %248 = vperm.xlu1 %523, %v230_v16   ;;  %v32_v34 = vld [vmem:[%s759_s1 + $0x18] sm:$0xff]  ;;  %v223_v35 = vld [vmem:[%s761_s3] sm:$0xff]  ;;  %v224_v52 = vld [vmem:[%s761_s3 + $0x8] sm:$0xff] }
  0x18   :  { %359 = vperm.xlu0 %522, %v353_v18   ;;  %514 = vmatprep.mubr.msk.f32.mxu1 %vm251_vm1, %v223_v35  ;;  %v225_v53 = vld [vmem:[%s761_s3 + $0x10] sm:$0xff]  ;;  %v226_v54 = vld [vmem:[%s761_s3 + $0x18] sm:$0xff]  ;;  %s563_s3 = smov [#allocation3]  }
  0x19   :  { %479 = vmatpush3.xpose.msk.msra.mxu0 %vm73_vm0, %v43_v14  ;;  %s408_s19 = sshll.u32 %s563_s3, 4  ;;  %s409_s19 = int_to_ptr.vmem [resolvable:$true] %s408_s19 }
  0x1a   :  { %480 = vmatprep.subr.msk.mxu0 %vm73_vm0, %v42_v17  ;;  %s540_s20 = scalar_lea.vmem %s409_s19, 16  ;;  %s544_s21 = scalar_lea.vmem %s409_s19, 32 }
  0x1b   :  { %364 = vperm.xlu1 %523, %v354_v19   ;;  %p541_p0 = scmp.ne.s32.totalorder %s409_s19, %s540_s20  ;;  %p545_p1 = scmp.lt.s32.totalorder %s409_s19, %s409_s19 }
  0x1c   :  { %369 = vperm.xlu0 %522, %v355_v21   ;;  %p546_p2 = scmp.lt.s32.totalorder %s544_s21, %s540_s20 }
  0x1d   :  { %481 = vmatpush3.xpose.msk.msra.mxu0 %vm73_vm0, %v42_v17  ;;  %v396_v17 = vlaneseq }
  0x1e   :  { %482 = vmatprep.subr.msk.mxu0 %vm73_vm0, %v41_v20  ;;  %p547_p3 = por %p546_p2, %p545_p1 }
  0x1f   :  { %374 = vperm.xlu1 %523, %v356_v22  }
  0x20   :  { %393 = vperm.xlu0 %522, %v390_v24   ;;  %p548_p4 = pnand %p547_p3, %p541_p0 }
  0x21   :  { %483 = vmatpush3.xpose.msk.msra.mxu0 %vm73_vm0, %v41_v20  ;;  %v397_v20 = vshrl.u32 %v396_v17, 7 }
  0x22   :  { %484 = vmatprep.subr.msk.mxu0 %vm73_vm0, %v40_v23 }
  0x25   :  { %485 = vmatpush3.xpose.msk.msra.mxu0 %vm73_vm0, %v40_v23  ;;  %v398_v23 = vsub.s32 0, %v397_v20 }
  0x26   :  { %486 = vmatprep.subr.msk.mxu0 %vm73_vm0, %v39_v25 }
  0x29   :  { %487 = vmatpush3.xpose.msk.msra.mxu0 %vm73_vm0, %v39_v25 }
  0x2a   :  { %488 = vmatprep.subr.msk.mxu0 %vm73_vm0, %v38_v26 }
  0x2d   :  { %489 = vmatpush3.xpose.msk.msra.mxu0 %vm73_vm0, %v38_v26 }
  0x2e   :  { %490 = vmatprep.subr.msk.mxu0 %vm73_vm0, %v37_v27 }
  0x31   :  { %491 = vmatpush3.xpose.msk.msra.mxu0 %vm73_vm0, %v37_v27 }
  0x32   :  { %492 = vmatprep.subr.msk.mxu0 %vm73_vm0, %v36_v28 }
  0x35   :  { %493 = vmatpush3.xpose.msk.msra.mxu0 %vm73_vm0, %v36_v28 }
  0x36   :  { %494 = vmatprep.subr.msk.mxu0 %vm73_vm0, %v35_v29 }
  0x39   :  { %495 = vmatpush3.xpose.msk.msra.mxu0 %vm73_vm0, %v35_v29 }
  0x3a   :  { %496 = vmatprep.subr.msk.mxu0 %vm73_vm0, %v34_v30 }
  0x3d   :  { %497 = vmatpush3.xpose.msk.msra.mxu0 %vm73_vm0, %v34_v30 }
  0x3e   :  { %498 = vmatprep.subr.msk.mxu0 %vm73_vm0, %v33_v31 }
  0x41   :  { %499 = vmatpush3.xpose.msk.msra.mxu0 %vm73_vm0, %v33_v31 }
  0x44   :  { %501 = vmatmul.mubr.msk.f32.vlgmr.msra.gmra.mxu0 %vm73_vm0, %v30_v32 }
  0x45   :  { %503 = vmatprep.mubr.msk.f32.mxu0 %vm73_vm0, %v31_v33 }
  0x48   :  { %504 = vmatmul.mubr.msk.f32.gmra.mxu0 %vm73_vm0, %v32_v34 }
  0x82   :  { %v71_v36 = vpop.permute.xlu0 %70  ;;  %v61_v38 = vpop.permute.xlu1 %60 }
  0x86   :  { %v66_v42 = vpop.permute.xlu0 %65 }
  0x8a   :  { %v56_v46 = vpop.permute.xlu1 %55 }
  0x8b   :  { %v234_v56 = vpop.permute.xlu0 %233 }
  0x8e   :  { %v239_v55 = vpop.permute.xlu1 %238 }
  0x8f   :  { %v244_v0 = vpop.permute.xlu0 %243 }
  0x92   :  { %v249_v61 = vpop.permute.xlu1 %248 }
  0x93   :  { %v360_v3 = vpop.permute.xlu0 %359 }
  0x96   :  { %v365_v6 = vpop.permute.xlu1 %364 }
  0x97   :  { %v370_v11 = vpop.permute.xlu0 %369 }
  0x9a   :  { %v375_v14 = vpop.permute.xlu1 %374 }
  0x9b   :  { %v394_v25 = vpop.permute.xlu0 %393 }
  0x9c   :  { %v399_v27 = vrot.slane %v394_v25, %v398_v23 }
 0x104   :  { %v502_v37 = vpop.f32.mrf.mxu0 }
 0x105   :  { %v206_v44 = vadd.f32 %v502_v37, %v61_v38 }
 0x106   :  { %v200_v39 = vpop.f32.mrf.mxu0 }
 0x107   :  { %v201_v47 = vadd.f32 %v200_v39, %v56_v46 }
 0x108   :  { %v505_v40 = vpop.f32.mrf.mxu0 }
 0x109   :  { %v216_v41 = vadd.f32 %v505_v40, %v71_v36 }
 0x10a   :  { %v210_v43 = vpop.f32.mrf.mxu0 }
 0x10b   :  { %524 = vtanh.f32 %v216_v41  ;;  %v211_v45 = vadd.f32 %v210_v43, %v66_v42 }
 0x10d   :  { %526 = vtanh.f32 %v211_v45 }
 0x10e   :  { %528 = vtanh.f32 %v206_v44 }
 0x10f   :  { %530 = vtanh.f32 %v201_v47 }
 0x118   :  { %v525_v48 = vpop.eup %524 }
 0x119   :  { %506 = vmatprep.subr.mxu1 %v525_v48 }
 0x11a   :  { %v527_v49 = vpop.eup %526  ;;  %507 = vmatpush3.msra.mxu1 %v525_v48 }
 0x11b   :  { %508 = vmatprep.subr.mxu1 %v527_v49  ;;  %v529_v50 = vpop.eup %528 }
 0x11c   :  { %509 = vmatpush3.msra.mxu1 %v527_v49  ;;  %v531_v51 = vpop.eup %530 }
 0x11d   :  { %510 = vmatprep.subr.mxu1 %v529_v50 }
 0x11e   :  { %511 = vmatpush3.msra.mxu1 %v529_v50 }
 0x11f   :  { %512 = vmatprep.subr.mxu1 %v531_v51 }
 0x120   :  { %513 = vmatpush3.msra.mxu1 %v531_v51 }
 0x121   :  { %515 = vmatmul.mubr.msk.f32.vlgmr.msra.gmra.mxu1 %vm251_vm1, %v224_v52 }
 0x122   :  { %517 = vmatprep.mubr.msk.f32.mxu1 %vm251_vm1, %v225_v53 }
 0x125   :  { %518 = vmatmul.mubr.msk.f32.gmra.mxu1 %vm251_vm1, %v226_v54 }
 0x1e1   :  { %v516_v57 = vpop.f32.mrf.mxu1 }
 0x1e2   :  { %v336_v58 = vadd.f32 %v516_v57, %v239_v55 }
 0x1e3   :  { %v330_v59 = vpop.f32.mrf.mxu1 }
 0x1e4   :  { %v331_v60 = vadd.f32 %v330_v59, %v234_v56  ;;  %532 = vtanh.f32 %v336_v58 }
 0x1e5   :  { %v519_v62 = vpop.f32.mrf.mxu1 }
 0x1e6   :  { %534 = vtanh.f32 %v331_v60  ;;  %v346_v63 = vadd.f32 %v519_v62, %v249_v61 }
 0x1e7   :  { %v340_v1 = vpop.f32.mrf.mxu1 }
 0x1e8   :  { %v341_v2 = vadd.f32 %v340_v1, %v244_v0  ;;  %536 = vtanh.f32 %v346_v63 }
 0x1ea   :  { %538 = vtanh.f32 %v341_v2 }
 0x1f1   :  { %v533_v4 = vpop.eup %532 }
 0x1f2   :  { %v378_v9 = vmul.f32 %v533_v4, %v365_v6 }
 0x1f3   :  { %v535_v5 = vpop.eup %534 }
 0x1f4   :  { %v377_v7 = vmul.f32 %v535_v5, %v360_v3 }
 0x1f5   :  { %v537_v8 = vpop.eup %536 }
 0x1f6   :  { %v381_v13 = vadd.f32 %v378_v9, %v377_v7  ;;  %v380_v15 = vmul.f32 %v537_v8, %v375_v14 }
 0x1f7   :  { %v539_v10 = vpop.eup %538 }
 0x1f8   :  { %v379_v12 = vmul.f32 %v539_v10, %v370_v11 }
 0x1fa   :  { %v382_v16 = vadd.f32 %v381_v13, %v379_v12 }
 0x1fc   :  { %v383_v18 = vadd.f32 %v382_v16, %v380_v15 }
 0x1fe   :  { %v384_v19 = vrot.slane %v383_v18, 4 }
 0x200   :  { %v385_v21 = vadd.f32 %v384_v19, %v383_v18 }
 0x202   :  { %v386_v22 = vrot.slane %v385_v21, 2 }
 0x204   :  { %v387_v24 = vadd.f32 %v386_v22, %v385_v21 }
 0x206   :  { %v388_v26 = vrot.slane %v387_v24, 1 }
 0x208   :  { %v389_v28 = vadd.f32 %v388_v26, %v387_v24 }
 0x20a   :  { %v400_v29 = vadd.f32 %v399_v27, %v389_v28 }
 0x20c   :  { %401 = vst [vmem:[#allocation3] sm:$0x1] %v400_v29 }
 0x20d   :  { %551 = shalt.err (!%p548_p4)
}
 0x20e   :  { %411 = dma.vmem_to_hbm [thread:$0]  %s409_s19, 16, %s765_s7, [#allocation4]  }
 0x20f   :  { %560 = dma.done.wait [#allocation4], 16  }
 0x210   :  { %561 = vsyncadd [#allocation4], 4294967280 }
 0x211   :  { %415 = vsyncpa [#allocation4], 1 }

</bundles_post_ra>
